<compile_context>
chip_gen: v5e
topology: v5e:2x2
jax: 0.10.0
libtpu: 0.0.40
codegen_flags: <defaults>
</compile_context>

<pallas_src>
import jax
import jax.numpy as jnp
from jax.experimental import pallas as pl
from jax.experimental.pallas import tpu as pltpu


_TARGET_TILE_BYTES = 4 * 1024 * 1024   # ~4 MiB per grid step
_VMEM_LIMIT_BYTES = 48 * 1024 * 1024   # fits v7x's 64 MiB VMEM; ample on v5e/v6e


def _divisor_tile(n, align, target):
    """Largest multiple-of-`align` divisor of n that is <= target, else None."""
    best = None
    b = align
    top = min(target, n)
    while b <= top:
        if n % b == 0:
            best = b
        b += align
    return best


def _select_tiles(N, C, L2):
    """Pick (bn, bc, bl) block sizes.

    * bc: multiple of 8 (sublane), capped at min(256, C//2) when C >= 16 so the
      "parallel" channel grid axis has extent >= 2 (v7x dual-TensorCore).
    * bl: lane-dense multiple of 128 dividing L2 (<= 8192); falls back to the
      full L2 for awkward shapes (stores become masked but stay correct).
    * bn: batch elements per block, grown until the block reaches ~4 MiB so
      per-step DMA amortizes pipeline overhead while the double-buffered
      working set stays inside the v7x VMEM budget.
    """
    cap_c = min(256, C // 2) if C >= 16 else C
    bc = _divisor_tile(C, 8, cap_c) or C
    bl = _divisor_tile(L2, 128, 8192) or L2
    # If a single (bc, bl) slab already blows the budget (huge unfactorable
    # L2), shrink the channel block instead of OOM-ing VMEM.
    while bc > 8 and bc * bl * 4 > _TARGET_TILE_BYTES:
        smaller = _divisor_tile(C, 8, bc // 2)
        if smaller is None:
            break
        bc = smaller
    bn = 1
    for cand in range(1, N + 1):
        if N % cand == 0 and cand * bc * bl * 4 <= _TARGET_TILE_BYTES:
            bn = cand
    return bn, bc, bl


def _stats_kernel(x_ref, sums_ref, accx_ref, accq_ref):
    """Accumulate per-channel raw sum(x) / sum(x^2) over (N, spatial).

    Streaming work is ~3 VPU ops/element into full-lane-width VMEM scratch;
    the real/imag parity split + cross-lane reduction + narrow (bc, 4) store
    run once per channel block in the epilogue.  Lane parity is consistent
    across column blocks because block widths are always even.
    """
    n_id = pl.program_id(1)
    l_id = pl.program_id(2)

    @pl.when(jnp.logical_and(n_id == 0, l_id == 0))
    def _init():
        accx_ref[...] = jnp.zeros_like(accx_ref)
        accq_ref[...] = jnp.zeros_like(accq_ref)

    x = x_ref[...].astype(jnp.float32)           # (bn, bc, bl)
    accx_ref[...] += jnp.sum(x, axis=0)          # (bc, bl)
    accq_ref[...] += jnp.sum(x * x, axis=0)      # (bc, bl)

    is_last = jnp.logical_and(n_id == pl.num_programs(1) - 1,
                              l_id == pl.num_programs(2) - 1)

    @pl.when(is_last)
    def _finalize():
        ax = accx_ref[...]
        aq = accq_ref[...]
        bc, bl = ax.shape
        lane = jax.lax.broadcasted_iota(jnp.int32, (bc, bl), 1)
        is_real = (lane & 1) == 0                # real/imag interleave parity
        sum_r = jnp.sum(jnp.where(is_real, ax, 0.0), axis=1, keepdims=True)
        sum_t = jnp.sum(ax, axis=1, keepdims=True)
        sq_r = jnp.sum(jnp.where(is_real, aq, 0.0), axis=1, keepdims=True)
        sq_t = jnp.sum(aq, axis=1, keepdims=True)
        sums_ref[...] = jnp.concatenate(
            [sum_r, sum_t - sum_r, sq_r, sq_t - sq_r], axis=1)


def _norm_kernel(x_ref, ss_ref, o_ref):
    """Fused y = x * scale + shift; scale/shift picked by lane parity (re/im)."""
    x = x_ref[...]                               # (bn, bc, bl)
    ss = ss_ref[...]                             # (bc, 4): [sc_r, sc_i, sh_r, sh_i]
    bn, bc, bl = x.shape
    lane = jax.lax.broadcasted_iota(jnp.int32, (bc, bl), 1)
    is_real = (lane & 1) == 0
    scale = jnp.where(is_real, ss[:, 0:1], ss[:, 1:2])   # (bc, bl)
    shift = jnp.where(is_real, ss[:, 2:3], ss[:, 3:4])
    y = x.astype(jnp.float32) * scale[None, :, :] + shift[None, :, :]
    o_ref[...] = y.astype(o_ref.dtype)


def cbatchnorm2d_forward(x, weight_real, bias_real, weight_imag, bias_imag,
                         eps=1e-5):
    """Training-mode CBatchNorm2d forward.  x: (N, C, H, W, 2) -> same shape."""
    N, C, H, W, two = x.shape
    assert two == 2
    L2 = H * W * 2                     # interleaved real/imag column length
    count = N * H * W                  # reduction count per (channel, part)

    # Free reshape (contiguous trailing dims) -- no HBM shuffle.
    x3 = x.reshape(N, C, L2)

    bn, bc, bl = _select_tiles(N, C, L2)
    grid = (C // bc, N // bn, L2 // bl)

    x_spec = pl.BlockSpec((bn, bc, bl), lambda c, n, l: (n, c, l))
    par_spec = pl.BlockSpec((bc, 4), lambda c, n, l: (c, 0))

    # Pass 1: per-channel [sum_r, sum_i, sumsq_r, sumsq_i]  (1 HBM read of x).
    sums = pl.pallas_call(
        _stats_kernel,
        out_shape=jax.ShapeDtypeStruct((C, 4), jnp.float32),
        grid_spec=pltpu.PrefetchScalarGridSpec(
            num_scalar_prefetch=0,
            grid=grid,
            in_specs=[x_spec],
            out_specs=par_spec,
            scratch_shapes=[pltpu.VMEM((bc, bl), jnp.float32),
                            pltpu.VMEM((bc, bl), jnp.float32)]),
        compiler_params=pltpu.CompilerParams(
            dimension_semantics=("parallel", "arbitrary", "arbitrary"),
            vmem_limit_bytes=_VMEM_LIMIT_BYTES),
    )(x3)

    # Tiny (C, 4) XLA epilogue: fold mean/var/weight/bias into per-(channel,
    # part) scale & shift.  Negligible traffic.
    # TODO(synk): E[x^2]-E[x]^2 in f32 is fine at these sizes; switch to a
    # compensated/pairwise combine if tolerances ever tighten.
    inv_count = 1.0 / float(count)
    mean = sums[:, 0:2] * inv_count                                 # (C, 2)
    var = jnp.maximum(sums[:, 2:4] * inv_count - mean * mean, 0.0)  # biased var
    w2 = jnp.stack([weight_real, weight_imag], axis=1).astype(jnp.float32)
    b2 = jnp.stack([bias_real, bias_imag], axis=1).astype(jnp.float32)
    scale = w2 * jax.lax.rsqrt(var + eps)
    shift = b2 - mean * scale
    ss = jnp.concatenate([scale, shift], axis=1)                    # (C, 4)

    # Pass 2: fused y = x * scale + shift   (1 HBM read + 1 HBM write).
    out3 = pl.pallas_call(
        _norm_kernel,
        out_shape=jax.ShapeDtypeStruct((N, C, L2), x.dtype),
        grid_spec=pltpu.PrefetchScalarGridSpec(
            num_scalar_prefetch=0,
            grid=grid,
            in_specs=[x_spec, par_spec],
            out_specs=x_spec),
        compiler_params=pltpu.CompilerParams(
            dimension_semantics=("parallel", "parallel", "parallel"),
            vmem_limit_bytes=_VMEM_LIMIT_BYTES),
    )(x3, ss)

    return out3.reshape(N, C, H, W, 2)


def _reference(x, wr, br, wi, bi, eps=1e-5):
    """Plain-JAX reference matching torch.nn.BatchNorm2d (training mode)."""
    xr, xi = x[..., 0], x[..., 1]

    def bn(v, w, b):
        mean = jnp.mean(v, axis=(0, 2, 3), keepdims=True)
        var = jnp.mean((v - mean) ** 2, axis=(0, 2, 3), keepdims=True)
        return (v - mean) / jnp.sqrt(var + eps) * w[None, :, None, None] \
               + b[None, :, None, None]

    return jnp.stack([bn(xr, wr, br), bn(xi, wi, bi)], axis=-1)


def _run_case(key, N, C, H, W):
    k_x, k_wr, k_br, k_wi, k_bi = jax.random.split(key, 5)
    x = jax.random.normal(k_x, (N, C, H, W, 2), dtype=jnp.float32)
    wr = 1.0 + 0.1 * jax.random.normal(k_wr, (C,), dtype=jnp.float32)
    br = 0.1 * jax.random.normal(k_br, (C,), dtype=jnp.float32)
    wi = 1.0 + 0.1 * jax.random.normal(k_wi, (C,), dtype=jnp.float32)
    bi = 0.1 * jax.random.normal(k_bi, (C,), dtype=jnp.float32)

    out = jax.block_until_ready(cbatchnorm2d_forward(x, wr, br, wi, bi))
    ref = _reference(x, wr, br, wi, bi)
    assert out.shape == (N, C, H, W, 2)
    assert jnp.allclose(out, ref, atol=1e-4, rtol=1e-4), \
        f"mismatch vs reference for (N,C,H,W)=({N},{C},{H},{W})"


if __name__ == "__main__":
    key = jax.random.PRNGKey(0)
    k0, k1, k2 = jax.random.split(key, 3)

    # Primary small case (a CBatchNorm2d instance inside the module).
    _run_case(k0, N=2, C=4, H=16, W=16)
    # Channel-split (v7x dual-TC parallel axis) + non-multiple-of-128 lane
    # width fallback (L2 = 200).
    _run_case(k1, N=2, C=32, H=10, W=10)
    # Multi-column-block grid: exercises cross-tile accumulation in pass 1.
    _run_case(k2, N=2, C=8, H=72, W=72)

    print("KERNEL_OK")
</pallas_src>

<mosaic_0001>
module attributes {stable_mosaic.version = 11 : i64} {
  func.func @_stats_kernel(%arg0: i32, %arg1: i32, %arg2: i32, %arg3: memref<2x4x512xf32, #tpu.memory_space<vmem>>, %arg4: memref<4x4xf32, #tpu.memory_space<vmem>>, %arg5: memref<4x512xf32, #tpu.memory_space<vmem>>, %arg6: memref<4x512xf32, #tpu.memory_space<vmem>>) attributes {dimension_semantics = [#tpu.dimension_semantics<parallel>, #tpu.dimension_semantics<arbitrary>, #tpu.dimension_semantics<arbitrary>], iteration_bounds = array<i64: 1, 1, 1>, scalar_prefetch = 0 : i64, scratch_operands = 2 : i64, tpu.core_type = #tpu.core_type<tc>, window_params = [{transform_indices = @transform_0, window_bounds = array<i64: 2, 4, 512>}, {transform_indices = @transform_1, window_bounds = array<i64: 4, 4>}]} {
    %c0_i32 = arith.constant 0 : i32
    %0 = arith.cmpi eq, %arg1, %c0_i32 : i32
    %c0_i32_0 = arith.constant 0 : i32
    %1 = arith.cmpi eq, %arg2, %c0_i32_0 : i32
    %2 = arith.andi %0, %1 : i1
    %3 = arith.extui %2 : i1 to i32
    %c0_i32_1 = arith.constant 0 : i32
    %4 = arith.cmpi ne, %3, %c0_i32_1 : i32
    scf.if %4 {
      %cst_16 = arith.constant 0.000000e+00 : f32
      %20 = vector.broadcast %cst_16 : f32 to vector<4x512xf32>
      %c0_17 = arith.constant 0 : index
      %c0_18 = arith.constant 0 : index
      %21 = vector.load %arg5[%c0_17, %c0_18] : memref<4x512xf32, #tpu.memory_space<vmem>>, vector<4x512xf32>
      tpu.vector_store %arg5[%c0_17, %c0_18], %20 {strides = array<i32>} : memref<4x512xf32, #tpu.memory_space<vmem>>, vector<4x512xf32>,
      %cst_19 = arith.constant 0.000000e+00 : f32
      %22 = vector.broadcast %cst_19 : f32 to vector<4x512xf32>
      %c0_20 = arith.constant 0 : index
      %c0_21 = arith.constant 0 : index
      %23 = vector.load %arg6[%c0_20, %c0_21] : memref<4x512xf32, #tpu.memory_space<vmem>>, vector<4x512xf32>
      tpu.vector_store %arg6[%c0_20, %c0_21], %22 {strides = array<i32>} : memref<4x512xf32, #tpu.memory_space<vmem>>, vector<4x512xf32>,
    } else {
    }
    %c0 = arith.constant 0 : index
    %c0_2 = arith.constant 0 : index
    %c0_3 = arith.constant 0 : index
    %5 = vector.load %arg3[%c0, %c0_2, %c0_3] : memref<2x4x512xf32, #tpu.memory_space<vmem>>, vector<2x4x512xf32>
    %c0_4 = arith.constant 0 : index
    %c0_5 = arith.constant 0 : index
    %6 = vector.load %arg5[%c0_4, %c0_5] : memref<4x512xf32, #tpu.memory_space<vmem>>, vector<4x512xf32>
    %cst = arith.constant dense<0.000000e+00> : vector<4x512xf32>
    %7 = vector.multi_reduction <add>, %5, %cst [0] : vector<2x4x512xf32> to vector<4x512xf32>
    %8 = arith.addf %6, %7 : vector<4x512xf32>
    %c0_6 = arith.constant 0 : index
    %c0_7 = arith.constant 0 : index
    %9 = vector.load %arg5[%c0_6, %c0_7] : memref<4x512xf32, #tpu.memory_space<vmem>>, vector<4x512xf32>
    tpu.vector_store %arg5[%c0_6, %c0_7], %8 {strides = array<i32>} : memref<4x512xf32, #tpu.memory_space<vmem>>, vector<4x512xf32>,
    %c0_8 = arith.constant 0 : index
    %c0_9 = arith.constant 0 : index
    %10 = vector.load %arg6[%c0_8, %c0_9] : memref<4x512xf32, #tpu.memory_space<vmem>>, vector<4x512xf32>
    %11 = arith.mulf %5, %5 : vector<2x4x512xf32>
    %cst_10 = arith.constant dense<0.000000e+00> : vector<4x512xf32>
    %12 = vector.multi_reduction <add>, %11, %cst_10 [0] : vector<2x4x512xf32> to vector<4x512xf32>
    %13 = arith.addf %10, %12 : vector<4x512xf32>
    %c0_11 = arith.constant 0 : index
    %c0_12 = arith.constant 0 : index
    %14 = vector.load %arg6[%c0_11, %c0_12] : memref<4x512xf32, #tpu.memory_space<vmem>>, vector<4x512xf32>
    tpu.vector_store %arg6[%c0_11, %c0_12], %13 {strides = array<i32>} : memref<4x512xf32, #tpu.memory_space<vmem>>, vector<4x512xf32>,
    %c0_i32_13 = arith.constant 0 : i32
    %15 = arith.cmpi eq, %arg1, %c0_i32_13 : i32
    %c0_i32_14 = arith.constant 0 : i32
    %16 = arith.cmpi eq, %arg2, %c0_i32_14 : i32
    %17 = arith.andi %15, %16 : i1
    %18 = arith.extui %17 : i1 to i32
    %c0_i32_15 = arith.constant 0 : i32
    %19 = arith.cmpi ne, %18, %c0_i32_15 : i32
    scf.if %19 {
      %c0_16 = arith.constant 0 : index
      %c0_17 = arith.constant 0 : index
      %20 = vector.load %arg5[%c0_16, %c0_17] : memref<4x512xf32, #tpu.memory_space<vmem>>, vector<4x512xf32>
      %c0_18 = arith.constant 0 : index
      %c0_19 = arith.constant 0 : index
      %21 = vector.load %arg6[%c0_18, %c0_19] : memref<4x512xf32, #tpu.memory_space<vmem>>, vector<4x512xf32>
      %22 = tpu.iota {dimensions = array<i32: 1>} : vector<4x512xi32>
      %c1_i32 = arith.constant 1 : i32
      %23 = vector.broadcast %c1_i32 : i32 to vector<4x512xi32>
      %24 = arith.andi %22, %23 : vector<4x512xi32>
      %c0_i32_20 = arith.constant 0 : i32
      %25 = vector.broadcast %c0_i32_20 : i32 to vector<4x512xi32>
      %26 = arith.cmpi eq, %24, %25 : vector<4x512xi32>
      %cst_21 = arith.constant 0.000000e+00 : f32
      %27 = vector.broadcast %cst_21 : f32 to vector<4x512xf32>
      %28 = arith.select %26, %20, %27 : vector<4x512xi1>, vector<4x512xf32>
      %cst_22 = arith.constant dense<0.000000e+00> : vector<4xf32>
      %29 = vector.multi_reduction <add>, %28, %cst_22 [1] : vector<4x512xf32> to vector<4xf32>
      %30 = vector.shape_cast %29 : vector<4xf32> to vector<4x1xf32>
      %cst_23 = arith.constant dense<0.000000e+00> : vector<4xf32>
      %31 = vector.multi_reduction <add>, %20, %cst_23 [1] : vector<4x512xf32> to vector<4xf32>
      %32 = vector.shape_cast %31 : vector<4xf32> to vector<4x1xf32>
      %cst_24 = arith.constant 0.000000e+00 : f32
      %33 = vector.broadcast %cst_24 : f32 to vector<4x512xf32>
      %34 = arith.select %26, %21, %33 : vector<4x512xi1>, vector<4x512xf32>
      %cst_25 = arith.constant dense<0.000000e+00> : vector<4xf32>
      %35 = vector.multi_reduction <add>, %34, %cst_25 [1] : vector<4x512xf32> to vector<4xf32>
      %36 = vector.shape_cast %35 : vector<4xf32> to vector<4x1xf32>
      %cst_26 = arith.constant dense<0.000000e+00> : vector<4xf32>
      %37 = vector.multi_reduction <add>, %21, %cst_26 [1] : vector<4x512xf32> to vector<4xf32>
      %38 = vector.shape_cast %37 : vector<4xf32> to vector<4x1xf32>
      %39 = arith.subf %32, %30 : vector<4x1xf32>
      %40 = arith.subf %38, %36 : vector<4x1xf32>
      %41 = tpu.concatenate %30, %39, %36, %40 in 1 : vector<4x1xf32>, vector<4x1xf32>, vector<4x1xf32>, vector<4x1xf32> -> vector<4x4xf32>
      %c0_27 = arith.constant 0 : index
      %c0_28 = arith.constant 0 : index
      %42 = vector.load %arg4[%c0_27, %c0_28] : memref<4x4xf32, #tpu.memory_space<vmem>>, vector<4x4xf32>
      tpu.vector_store %arg4[%c0_27, %c0_28], %41 {strides = array<i32>} : memref<4x4xf32, #tpu.memory_space<vmem>>, vector<4x4xf32>,
    } else {
    }
    return
  }
  func.func @transform_0(%arg0: i32, %arg1: i32, %arg2: i32) -> (i32, i32, i32) {
    %c0_i32 = arith.constant 0 : i32
    return %arg1, %arg0, %arg2 : i32, i32, i32
  }
  func.func @transform_1(%arg0: i32, %arg1: i32, %arg2: i32) -> (i32, i32) {
    %c0_i32 = arith.constant 0 : i32
    %c0_i32_0 = arith.constant 0 : i32
    return %arg0, %c0_i32 : i32, i32
  }
}

</mosaic_0001>

<bundles_post_ra>
// kernel: tpu_custom_call.1
= control target key start
LH: loop header
LB: loop body
LE: loop exit
PB: predicated region body
PF: predicated region fallthrough
CT: control target
= control target key end

     0   :  { %6 = vsyncpa [#allocation5], 0  ;;  %s436_s0 = inlined_call_operand.hbm [shape: f32[2,4,512], index: 0, kind: input, shape index: {}]   ;;  %s437_s1 = inlined_call_operand.hbm [shape: f32[4,4], index: 1, kind: output, shape index: {}]  }
   0x1   :  { %7 = vsyncpa [#allocation6], 0  ;;  %s12_s8 = sshll.u32 %s436_s0, 4  ;;  %s348_s9 = smov [#allocation4]   ;;  %s13_s8 = int_to_ptr.hbm [resolvable:$true] %s12_s8 }
   0x2   :  { %s14_s10 = sshll.u32 %s348_s9, 4  ;;  %s349_s11 = smov 256   ;;  %s15_s10 = int_to_ptr.vmem [resolvable:$true] %s14_s10 }
   0x3   :  { %s350_s12 = smov 16  }
   0x4   :  { %20 = dma.hbm_to_vmem [thread:$0]  %s13_s8, 512, %s15_s10, [#allocation5], %s349_s11, %s349_s11, %s350_s12  }
   0x5   :  { %344 = dma.done.wait [#allocation5], 512  }
   0x6   :  { %345 = vsyncadd [#allocation5], 4294966784  ;;  %v35_v0 = vld [vmem:[#allocation4] sm:$0xff]  ;;  %v36_v1 = vld [vmem:[#allocation4 + $0x8] sm:$0xff]  ;;  %vm68_vm0 = vcmask 1043456   ;;  %v160_v16 = vlaneseq  ;;  %vm267_vm5 = vcmask 7168  }
   0x7   :  { %v37_v2 = vld [vmem:[#allocation4 + $0x10] sm:$0xff]  ;;  %v38_v3 = vld [vmem:[#allocation4 + $0x18] sm:$0xff]  ;;  %45 = vst [vmem:[#allocation1] ss:$2 sm:$0xff] %v35_v0  ;;  %v97_v6 = vmul.f32 %v35_v0, %v35_v0  ;;  %v98_v9 = vmul.f32 %v36_v1, %v36_v1  ;;  %vm269_vm6 = vcmask 15360   ;;  %s351_s0 = smov [#allocation7]  }
   0x8   :  { %47 = vst [vmem:[#allocation1 + $0x10] ss:$2 sm:$0xff] %v36_v1  ;;  %v99_v12 = vmul.f32 %v37_v2, %v37_v2  ;;  %v100_v15 = vmul.f32 %v38_v3, %v38_v3  ;;  %v161_v27 = vand.u32 127, %v160_v16  ;;  %s280_s13 = sshll.u32 %s351_s0, 4  ;;  %s282_s16 = sshll.u32 %s437_s1, 4  ;;  %vm271_vm7 = vcmask 23552   ;;  %s281_s13 = int_to_ptr.vmem [resolvable:$true] %s280_s13  ;;  %s283_s16 = int_to_ptr.hbm [resolvable:$true] %s282_s16 }
   0x9   :  { %53 = vst [vmem:[#allocation1 + $0x20] ss:$2 sm:$0xff] %v37_v2  ;;  %vm273_vm8 = vcmask 27648  }
   0xa   :  { %55 = vst [vmem:[#allocation1 + $0x30] ss:$2 sm:$0xff] %v38_v3  ;;  %v162_v32 = vadd.s32 128, %v161_v27  ;;  %v163_v33 = vadd.s32 256, %v161_v27  ;;  %v164_v34 = vadd.s32 384, %v161_v27  ;;  %v165_v41 = vand.u32 1, %v161_v27 }
   0xc   :  { %v166_v42 = vand.u32 1, %v162_v32  ;;  %v167_v43 = vand.u32 1, %v163_v33  ;;  %v168_v45 = vand.u32 1, %v164_v34  ;;  %vm377_vm1 = vcmp.eq.s32.totalorder %v165_v41, 0 }
   0xe   :  { %v48_v4 = vld.sshfl [vmem:[#allocation1] sm:$0xff pattern:$0x75316420]  ;;  %v49_v5 = vld.sshfl [vmem:[#allocation1 + $0x8] sm:$0xff pattern:$0x75316420] }
   0xf   :  { %v50_v7 = vld.sshfl [vmem:[#allocation1 + $0x10] sm:$0xff pattern:$0x75316420]  ;;  %v51_v8 = vld.sshfl [vmem:[#allocation1 + $0x18] sm:$0xff pattern:$0x75316420] }
  0x10   :  { %v56_v10 = vld.sshfl [vmem:[#allocation1 + $0x20] sm:$0xff pattern:$0x75316420]  ;;  %v57_v11 = vld.sshfl [vmem:[#allocation1 + $0x28] sm:$0xff pattern:$0x75316420] }
  0x11   :  { %v58_v13 = vld.sshfl [vmem:[#allocation1 + $0x30] sm:$0xff pattern:$0x75316420]  ;;  %v59_v14 = vld.sshfl [vmem:[#allocation1 + $0x38] sm:$0xff pattern:$0x75316420] }
  0x12   :  { %v72_v17 = vsel %vm68_vm0, %v49_v5, 0.0  ;;  %v73_v18 = vsel %vm68_vm0, %v57_v11, 0.0  ;;  %105 = vst [vmem:[#allocation1] ss:$2 sm:$0xff] %v97_v6  ;;  %v69_v19 = vsel %vm68_vm0, %v48_v4, 0.0  ;;  %v70_v20 = vsel %vm68_vm0, %v56_v10, 0.0 }
  0x13   :  { %v74_v21 = vadd.f32 %v73_v18, %v72_v17  ;;  %107 = vst [vmem:[#allocation1 + $0x10] ss:$2 sm:$0xff] %v98_v9  ;;  %v75_v22 = vsel %vm68_vm0, %v50_v7, 0.0  ;;  %v76_v23 = vsel %vm68_vm0, %v58_v13, 0.0  ;;  %v78_v24 = vsel %vm68_vm0, %v51_v8, 0.0 }
  0x14   :  { %v79_v25 = vsel %vm68_vm0, %v59_v14, 0.0  ;;  %113 = vst [vmem:[#allocation1 + $0x20] ss:$2 sm:$0xff] %v99_v12  ;;  %v71_v28 = vadd.f32 %v70_v20, %v69_v19  ;;  %v77_v30 = vadd.f32 %v76_v23, %v75_v22  ;;  %vm381_vm2 = vcmp.eq.s32.totalorder %v166_v42, 0 }
  0x15   :  { %v80_v26 = vadd.f32 %v79_v25, %v78_v24  ;;  %115 = vst [vmem:[#allocation1 + $0x30] ss:$2 sm:$0xff] %v100_v15  ;;  %v85_v29 = vrot.slane %v74_v21, 4  ;;  %vm387_vm3 = vcmp.eq.s32.totalorder %v167_v43, 0  ;;  %vm391_vm4 = vcmp.eq.s32.totalorder %v168_v45, 0 }
  0x17   :  { %v86_v31 = vrot.slane %v80_v26, 4  ;;  %v87_v35 = vsel %vm68_vm0, %v71_v28, %v85_v29 }
  0x19   :  { %v108_v36 = vld.sshfl [vmem:[#allocation1] sm:$0xff pattern:$0x75316420]  ;;  %v109_v37 = vld.sshfl [vmem:[#allocation1 + $0x8] sm:$0xff pattern:$0x75316420]  ;;  %v88_v38 = vsel %vm68_vm0, %v77_v30, %v86_v31 }
  0x1a   :  { %v110_v39 = vld.sshfl [vmem:[#allocation1 + $0x10] sm:$0xff pattern:$0x75316420]  ;;  %v111_v40 = vld.sshfl [vmem:[#allocation1 + $0x18] sm:$0xff pattern:$0x75316420] }
  0x1b   :  { %175 = vst [vmem:[#allocation1] ss:$2 sm:$0xff] %v87_v35  ;;  %v117_v44 = vld.sshfl [vmem:[#allocation1 + $0x28] sm:$0xff pattern:$0x75316420]  ;;  %v131_v49 = vsel %vm68_vm0, %v109_v37, 0.0 }
  0x1c   :  { %177 = vst [vmem:[#allocation1 + $0x10] ss:$2 sm:$0xff] %v88_v38  ;;  %v119_v46 = vld.sshfl [vmem:[#allocation1 + $0x38] sm:$0xff pattern:$0x75316420]  ;;  %v132_v50 = vsel %vm68_vm0, %v117_v44, 0.0 }
  0x1d   :  { %v116_v47 = vld.sshfl [vmem:[#allocation1 + $0x20] sm:$0xff pattern:$0x75316420]  ;;  %v118_v48 = vld.sshfl [vmem:[#allocation1 + $0x30] sm:$0xff pattern:$0x75316420]  ;;  %v133_v61 = vadd.f32 %v132_v50, %v131_v49 }
  0x1e   :  { %v137_v53 = vsel %vm68_vm0, %v111_v40, 0.0  ;;  %v138_v54 = vsel %vm68_vm0, %v119_v46, 0.0  ;;  %v128_v57 = vsel %vm68_vm0, %v108_v36, 0.0  ;;  %v129_v58 = vsel %vm68_vm0, %v116_v47, 0.0 }
  0x1f   :  { %v134_v59 = vsel %vm68_vm0, %v110_v39, 0.0  ;;  %v135_v60 = vsel %vm68_vm0, %v118_v48, 0.0  ;;  %v139_v0 = vadd.f32 %v138_v54, %v137_v53  ;;  %v130_v10 = vadd.f32 %v129_v58, %v128_v57 }
  0x20   :  { %v144_v11 = vrot.slane %v133_v61, 4  ;;  %v136_v13 = vadd.f32 %v135_v60, %v134_v59 }
  0x21   :  { %v145_v14 = vrot.slane %v139_v0, 4 }
  0x22   :  { %v178_v62 = vld.sshfl [vmem:[#allocation1] sm:$0xff pattern:$0x75316420]  ;;  %v179_v63 = vld.sshfl [vmem:[#allocation1 + $0x8] sm:$0xff pattern:$0x75316420]  ;;  %v146_v17 = vsel %vm68_vm0, %v130_v10, %v144_v11 }
  0x23   :  { %v180_v1 = vld.sshfl [vmem:[#allocation1 + $0x10] sm:$0xff pattern:$0x75316420]  ;;  %v181_v2 = vld.sshfl [vmem:[#allocation1 + $0x18] sm:$0xff pattern:$0x75316420]  ;;  %v147_v19 = vsel %vm68_vm0, %v136_v13, %v145_v14 }
  0x24   :  { %v186_v3 = vsel %vm377_vm1, %v178_v62, 0.0  ;;  %v187_v4 = vsel %vm381_vm2, %v179_v63, 0.0  ;;  %v188_v5 = vsel %vm387_vm3, %v180_v1, 0.0  ;;  %v189_v6 = vsel %vm391_vm4, %v181_v2, 0.0  ;;  %199 = vst [vmem:[#allocation1] ss:$2 sm:$0xff] %v87_v35 }
  0x25   :  { %v190_v7 = vsel %vm68_vm0, %v186_v3, 0.0  ;;  %v191_v8 = vsel %vm68_vm0, %v187_v4, 0.0  ;;  %v193_v9 = vsel %vm68_vm0, %v188_v5, 0.0  ;;  %201 = vst [vmem:[#allocation1 + $0x10] ss:$2 sm:$0xff] %v88_v38  ;;  %v195_v15 = vsel %vm68_vm0, %v189_v6, 0.0 }
  0x26   :  { %v192_v12 = vadd.f32 %v191_v8, %v190_v7 }
  0x28   :  { %v194_v16 = vadd.f32 %v193_v9, %v192_v12 }
  0x2a   :  { %v196_v18 = vadd.f32 %v195_v15, %v194_v16 }
  0x2b   :  { %v202_v20 = vld.sshfl [vmem:[#allocation1] sm:$0xff pattern:$0x75316420]  ;;  %v203_v21 = vld.sshfl [vmem:[#allocation1 + $0x8] sm:$0xff pattern:$0x75316420] }
  0x2c   :  { %197 = vadd.xlane.f32.xlu0 %v196_v18  ;;  %v204_v22 = vld.sshfl [vmem:[#allocation1 + $0x10] sm:$0xff pattern:$0x75316420]  ;;  %v205_v23 = vld.sshfl [vmem:[#allocation1 + $0x18] sm:$0xff pattern:$0x75316420] }
  0x2d   :  { %v210_v24 = vsel %vm68_vm0, %v202_v20, 0.0  ;;  %v211_v25 = vsel %vm68_vm0, %v203_v21, 0.0  ;;  %v213_v26 = vsel %vm68_vm0, %v204_v22, 0.0  ;;  %221 = vst [vmem:[#allocation1] ss:$2 sm:$0xff] %v146_v17  ;;  %v215_v28 = vsel %vm68_vm0, %v205_v23, 0.0 }
  0x2e   :  { %v212_v27 = vadd.f32 %v211_v25, %v210_v24  ;;  %223 = vst [vmem:[#allocation1 + $0x10] ss:$2 sm:$0xff] %v147_v19 }
  0x30   :  { %v214_v29 = vadd.f32 %v213_v26, %v212_v27 }
  0x32   :  { %v216_v30 = vadd.f32 %v215_v28, %v214_v29 }
  0x34   :  { %217 = vadd.xlane.f32.xlu0 %v216_v30  ;;  %v224_v31 = vld.sshfl [vmem:[#allocation1] sm:$0xff pattern:$0x75316420]  ;;  %v225_v32 = vld.sshfl [vmem:[#allocation1 + $0x8] sm:$0xff pattern:$0x75316420] }
  0x35   :  { %v226_v33 = vld.sshfl [vmem:[#allocation1 + $0x10] sm:$0xff pattern:$0x75316420]  ;;  %v227_v34 = vld.sshfl [vmem:[#allocation1 + $0x18] sm:$0xff pattern:$0x75316420] }
  0x36   :  { %v232_v35 = vsel %vm377_vm1, %v224_v31, 0.0  ;;  %v233_v36 = vsel %vm381_vm2, %v225_v32, 0.0  ;;  %v234_v37 = vsel %vm387_vm3, %v226_v33, 0.0  ;;  %v235_v38 = vsel %vm391_vm4, %v227_v34, 0.0  ;;  %245 = vst [vmem:[#allocation1] ss:$2 sm:$0xff] %v146_v17 }
  0x37   :  { %v236_v39 = vsel %vm68_vm0, %v232_v35, 0.0  ;;  %v237_v40 = vsel %vm68_vm0, %v233_v36, 0.0  ;;  %v239_v41 = vsel %vm68_vm0, %v234_v37, 0.0  ;;  %247 = vst [vmem:[#allocation1 + $0x10] ss:$2 sm:$0xff] %v147_v19  ;;  %v241_v43 = vsel %vm68_vm0, %v235_v38, 0.0 }
  0x38   :  { %v238_v42 = vadd.f32 %v237_v40, %v236_v39 }
  0x3a   :  { %v240_v44 = vadd.f32 %v239_v41, %v238_v42 }
  0x3c   :  { %v242_v45 = vadd.f32 %v241_v43, %v240_v44 }
  0x3d   :  { %v248_v46 = vld.sshfl [vmem:[#allocation1] sm:$0xff pattern:$0x75316420]  ;;  %v249_v47 = vld.sshfl [vmem:[#allocation1 + $0x8] sm:$0xff pattern:$0x75316420] }
  0x3e   :  { %243 = vadd.xlane.f32.xlu1 %v242_v45  ;;  %v250_v48 = vld.sshfl [vmem:[#allocation1 + $0x10] sm:$0xff pattern:$0x75316420]  ;;  %v251_v49 = vld.sshfl [vmem:[#allocation1 + $0x18] sm:$0xff pattern:$0x75316420] }
  0x3f   :  { %v256_v50 = vsel %vm68_vm0, %v248_v46, 0.0  ;;  %v257_v51 = vsel %vm68_vm0, %v249_v47, 0.0  ;;  %v259_v52 = vsel %vm68_vm0, %v250_v48, 0.0  ;;  %v261_v54 = vsel %vm68_vm0, %v251_v49, 0.0 }
  0x40   :  { %v258_v53 = vadd.f32 %v257_v51, %v256_v50 }
  0x42   :  { %v260_v55 = vadd.f32 %v259_v52, %v258_v53 }
  0x44   :  { %v262_v56 = vadd.f32 %v261_v54, %v260_v55 }
  0x46   :  { %263 = vadd.xlane.f32.xlu1 %v262_v56 }
  0x9f   :  { %v198_v57 = vpop.xlane.xlu0 %197 }
  0xa7   :  { %v218_v58 = vpop.xlane.xlu0 %217 }
  0xa8   :  { %v265_v60 = vsub.f32 %v218_v58, %v198_v57 }
  0xaa   :  { %v268_v61 = vsel %vm267_vm5, %v198_v57, %v265_v60 }
  0xb1   :  { %v244_v59 = vpop.xlane.xlu1 %243 }
  0xb2   :  { %v270_v0 = vsel %vm269_vm6, %v268_v61, %v244_v59 }
  0xb9   :  { %v264_v62 = vpop.xlane.xlu1 %263 }
  0xba   :  { %v266_v63 = vsub.f32 %v264_v62, %v244_v59 }
  0xbc   :  { %v272_v1 = vsel %vm271_vm7, %v270_v0, %v266_v63 }
  0xbd   :  { %274 = vst.msk [vmem:[#allocation7] sm:$0xf] %vm273_vm8, %v272_v1 }
  0xbe   :  { %285 = dma.vmem_to_hbm [thread:$0]  %s281_s13, 64, %s283_s16, [#allocation6]  }
  0xbf   :  { %346 = dma.done.wait [#allocation6], 64  }
  0xc0   :  { %347 = vsyncadd [#allocation6], 4294967232 }
  0xc1   :  { %290 = vsyncpa [#allocation5], 1 }
  0xc2   :  { %291 = vsyncpa [#allocation6], 1 }

</bundles_post_ra>
